<compile_context>
chip_gen: v6e
topology: v6e:2x2x1
jax: 0.10.0
libtpu: 0.0.40
codegen_flags: <defaults>
</compile_context>

<pallas_src>
import functools

import jax
import jax.numpy as jnp
from jax.experimental import pallas as pl
from jax.experimental.pallas import tpu as pltpu


def _multiple_lsh_kernel(x_ref, wt_ref, out_ref):
    # x_ref:  (TB, D)   batch tile of inputs
    # wt_ref: (D, TN)   transposed, lane-padded projection-weight tile
    # out_ref:(TB, TN)  hash tile
    out_ref[...] = jnp.dot(
        x_ref[...], wt_ref[...], preferred_element_type=jnp.float32
    ).astype(out_ref.dtype)


_VMEM_LIMIT_BYTES = None


def _vmem_limit_bytes():
    """Generation-aware VMEM limit (~3/4 of physical VMEM, capped at 100 MiB)."""
    global _VMEM_LIMIT_BYTES
    if _VMEM_LIMIT_BYTES is None:
        try:
            cap = int(pltpu.get_tpu_info().vmem_capacity_bytes)
        except Exception:
            cap = 64 * 1024 * 1024              # conservative: v7x physical VMEM
        _VMEM_LIMIT_BYTES = min((cap * 3) // 4, 100 * 1024 * 1024)
    return _VMEM_LIMIT_BYTES


def _round_up(x, m):
    return ((x + m - 1) // m) * m


def _pick_tiles(B, D, K_pad, tile_budget_bytes):
    """Pick (tb, tn, single_buffer_weights) for the (batch, out-feature) grid."""
    itemsize = 4
    # K tile: lane-dense, MXU-friendly, and divides K_pad (K_pad is a 128-multiple).
    tn = K_pad if K_pad <= 512 else 512
    while K_pad % tn:
        tn -= 128

    # Single-buffer the constant weight tile only when the saved buffer matters.
    w_block_bytes = D * tn * itemsize
    single_buffer_weights = w_block_bytes >= (1 << 20)
    w_buffers = 1 if single_buffer_weights else 2

    # Double-buffered x row + out row, plus the resident weight tile.
    row_bytes = 2 * itemsize * (D + tn)
    avail = max(tile_budget_bytes - w_buffers * w_block_bytes, 8 * row_bytes)
    tb = avail // row_bytes
    tb = min(tb, 8192)                          # amortizes ~0.35us/step, keeps grid non-trivial
    tb = min(tb, _round_up(B, 8))
    if B >= 16:
        # Keep at least two batch blocks so both v7x TensorCores get work.
        tb = min(tb, _round_up((B + 1) // 2, 8))
    tb = max(8, (tb // 8) * 8)
    return tb, tn, single_buffer_weights


@functools.partial(jax.jit, static_argnames=("use_pallas",))
def multiple_lsh(x, weights, *, use_pallas=True):
    """x: (B, D) f32, weights: (K, D) f32  ->  (B, K) f32  ==  x @ weights.T"""
    B, D = x.shape
    K = weights.shape[0]

    if not use_pallas:
        # For tiny problems the fixed pallas_call overhead dominates; let XLA fuse it.
        return jnp.dot(x, weights.T, preferred_element_type=jnp.float32)

    # Lane-dense output: pad K up to a multiple of 128 with zero columns.
    K_pad = _round_up(max(K, 1), 128)
    wt = weights.T.astype(jnp.float32)                      # (D, K)
    if K_pad != K:
        wt = jnp.pad(wt, ((0, 0), (0, K_pad - K)))          # zero columns, tiny copy

    vmem_limit = _vmem_limit_bytes()
    tile_budget = (vmem_limit * 4) // 5                     # headroom for internal scratch
    tb, tn, single_buffer_w = _pick_tiles(B, D, K_pad, tile_budget)

    # Only pad the batch when it is smaller than one 8-row sublane tile; otherwise
    # ragged last blocks are handled by Pallas boundary masking (no HBM copy of x).
    B_eff = B
    if B < 8:
        x = jnp.pad(x, ((0, 8 - B), (0, 0)))
        B_eff = 8

    grid_b = pl.cdiv(B_eff, tb)
    grid_n = K_pad // tn

    w_spec_kwargs = {}
    if single_buffer_w:
        # Constant block index -> a second pipeline buffer is pure VMEM waste.
        w_spec_kwargs["pipeline_mode"] = pl.Buffered(1)

    out = pl.pallas_call(
        _multiple_lsh_kernel,
        out_shape=jax.ShapeDtypeStruct((B_eff, K_pad), jnp.float32),
        grid_spec=pl.GridSpec(
            grid=(grid_b, grid_n),
            in_specs=[
                pl.BlockSpec((tb, D), lambda i, j: (i, 0)),
                pl.BlockSpec((D, tn), lambda i, j: (0, j), **w_spec_kwargs),
            ],
            out_specs=pl.BlockSpec((tb, tn), lambda i, j: (i, j)),
        ),
        compiler_params=pltpu.CompilerParams(
            dimension_semantics=("parallel", "parallel"),
            vmem_limit_bytes=vmem_limit,
        ),
    )(x, wt)
    # TODO(synk): for MXU-bound shapes (large D and K) a bf16 weight/input path
    # would roughly double v6e/v7x matmul throughput; kept f32 to match torch.
    return out[:B, :K]


def init_weights(key, num_components, input_length, scale=1.0, dist="unif"):
    """Match MultipleLSH.__init__ parameter shapes/distributions."""
    if dist == "normal":
        return jax.random.normal(key, (num_components, input_length), jnp.float32) * scale
    # dist == 'unif' (module default path): U[-scale, scale]
    return (jax.random.uniform(key, (num_components, input_length), jnp.float32)
            * (2.0 * scale) - scale)


if __name__ == "__main__":
    B = 8
    input_length = 32
    num_components = 4

    key = jax.random.PRNGKey(0)
    kx, kw = jax.random.split(key)
    x = jax.random.normal(kx, (B, input_length), jnp.float32)
    weights = init_weights(kw, num_components, input_length, scale=1.0)

    out = multiple_lsh(x, weights)
    out = jax.block_until_ready(out)

    # pure-JAX reference: ret[:, k] = x @ weights[k, :]
    ref = x @ weights.T
    assert out.shape == (B, num_components)
    assert jnp.allclose(out, ref, atol=1e-5, rtol=1e-5)

    print("KERNEL_OK")
</pallas_src>

<mosaic_0001>
module attributes {stable_mosaic.version = 11 : i64} {
  func.func @_multiple_lsh_kernel(%arg0: i32, %arg1: i32, %arg2: memref<8x32xf32, #tpu.memory_space<vmem>>, %arg3: memref<32x128xf32, #tpu.memory_space<vmem>>, %arg4: memref<8x128xf32, #tpu.memory_space<vmem>>) attributes {dimension_semantics = [#tpu.dimension_semantics<parallel>, #tpu.dimension_semantics<parallel>], iteration_bounds = array<i64: 1, 1>, scalar_prefetch = 0 : i64, scratch_operands = 0 : i64, tpu.core_type = #tpu.core_type<tc>, window_params = [{transform_indices = @transform_0, window_bounds = array<i64: 8, 32>}, {transform_indices = @transform_1, window_bounds = array<i64: 32, 128>}, {transform_indices = @transform_2, window_bounds = array<i64: 8, 128>}]} {
    %c0 = arith.constant 0 : index
    %c0_0 = arith.constant 0 : index
    %0 = vector.load %arg2[%c0, %c0_0] : memref<8x32xf32, #tpu.memory_space<vmem>>, vector<8x32xf32>
    %c0_1 = arith.constant 0 : index
    %c0_2 = arith.constant 0 : index
    %1 = vector.load %arg3[%c0_1, %c0_2] : memref<32x128xf32, #tpu.memory_space<vmem>>, vector<32x128xf32>
    %cst = arith.constant dense<0.000000e+00> : vector<8x128xf32>
    %2 = tpu.matmul %0, %1, %cst {dimension_numbers = #tpu.dot_dimension_numbers<[1], [0], [0], [1], [0, 0, 1, 1], [], []>} : vector<8x32xf32>, vector<32x128xf32>, vector<8x128xf32> -> vector<8x128xf32>
    %c0_3 = arith.constant 0 : index
    %c0_4 = arith.constant 0 : index
    %3 = vector.load %arg4[%c0_3, %c0_4] : memref<8x128xf32, #tpu.memory_space<vmem>>, vector<8x128xf32>
    tpu.vector_store %arg4[%c0_3, %c0_4], %2 {strides = array<i32>} : memref<8x128xf32, #tpu.memory_space<vmem>>, vector<8x128xf32>,
    return
  }
  func.func @transform_0(%arg0: i32, %arg1: i32) -> (i32, i32) {
    %c0_i32 = arith.constant 0 : i32
    %c0_i32_0 = arith.constant 0 : i32
    return %arg0, %c0_i32 : i32, i32
  }
  func.func @transform_1(%arg0: i32, %arg1: i32) -> (i32, i32) {
    %c0_i32 = arith.constant 0 : i32
    %c0_i32_0 = arith.constant 0 : i32
    return %c0_i32, %arg1 : i32, i32
  }
  func.func @transform_2(%arg0: i32, %arg1: i32) -> (i32, i32) {
    %c0_i32 = arith.constant 0 : i32
    return %arg0, %arg1 : i32, i32
  }
}

</mosaic_0001>

<bundles_post_ra>
// kernel: multiple_lsh.1
= control target key start
LH: loop header
LB: loop body
LE: loop exit
PB: predicated region body
PF: predicated region fallthrough
CT: control target
= control target key end

     0   :  { %v114_v0 = vmov 0.0   ;;  %vm115_vm0 = vmmov 0   ;;  %vm16_vm1 = vcmask 261120   ;;  %s149_s1 = inlined_call_operand.vmem [shape: f32[32,128], index: 1, kind: input, shape index: {}]   ;;  %s150_s0 = inlined_call_operand.vmem [shape: f32[8,32], index: 0, kind: input, shape index: {}]   ;;  %s151_s2 = inlined_call_operand.vmem [shape: f32[8,128], index: 2, kind: output, shape index: {}]  }
   0x1   :  { %101 = vmatprep.subr.mxu0 %v114_v0  ;;  %v15_v1 = vld [vmem:[%s149_s1 + $0x18] sm:$0xff]  ;;  %v14_v2 = vld [vmem:[%s149_s1 + $0x10] sm:$0xff]  ;;  %109 = vmatprep.mubr.msk.f32.mxu0 %vm115_vm0, %v114_v0  ;;  %v13_v3 = vld [vmem:[%s149_s1 + $0x8] sm:$0xff] }
   0x2   :  { %102 = vmatpush3.msra.mxu0 %v15_v1  ;;  %v12_v4 = vld [vmem:[%s149_s1] sm:$0xff] }
   0x3   :  { %103 = vmatprep.subr.mxu0 %v114_v0  ;;  %v11_v5 = vld [vmem:[%s150_s0] sm:$0xff] }
   0x4   :  { %104 = vmatpush3.msra.mxu0 %v14_v2 }
   0x5   :  { %105 = vmatprep.subr.mxu0 %v114_v0 }
   0x6   :  { %106 = vmatpush3.msra.mxu0 %v13_v3 }
   0x7   :  { %107 = vmatprep.subr.mxu0 %v114_v0 }
   0x8   :  { %108 = vmatpush3.msra.mxu0 %v12_v4 }
   0x9   :  { %110 = vmatmul.mubr.msk.f32.vlgmr.msra.gmra.mxu0 %vm16_vm1, %v11_v5 }
  0xc9   :  { %v86_v6 = vpop.f32.mrf.mxu0 }
  0xca   :  { %90 = vst [vmem:[%s151_s2] sm:$0xff] %v86_v6 }
  0xcb   :  { %v111_v7 = vpop.f32.mrf.mxu0 }

</bundles_post_ra>
